<compile_context>
chip_gen: v6e
topology: v6e:2x2x1
jax: 0.10.0
libtpu: 0.0.40
codegen_flags: <defaults>
</compile_context>

<pallas_src>
import jax
import jax.numpy as jnp
from jax.experimental import pallas as pl
from jax.experimental.pallas import tpu as pltpu


# ---------------------------------------------------------------------------
# Kernels
# ---------------------------------------------------------------------------
def se_block_kernel(x_ref, w1_ref, b1_ref, w2s_ref, b2s_ref, w2b_ref, b2b_ref, o_ref):
    """Fused single-pass SE: squeeze + excite + apply for a (Bt, C, HW) block."""
    x = x_ref[...]                                         # native I/O dtype
    inv_hw = 1.0 / x.shape[-1]

    # --- squeeze: global average pool == one lane reduction, f32 accumulation ---
    s = jnp.sum(x, axis=-1, dtype=jnp.float32) * inv_hw    # (Bt, C)

    # --- excite: Linear -> ReLU -> two pre-split Linears (scale / bias halves) ---
    h = jnp.dot(s, w1_ref[...], preferred_element_type=jnp.float32) + b1_ref[...]
    h = jnp.maximum(h, 0.0)                                 # (Bt, Cr)
    scale = jax.nn.sigmoid(
        jnp.dot(h, w2s_ref[...], preferred_element_type=jnp.float32) + b2s_ref[...]
    )                                                       # (Bt, C)
    bias = jnp.dot(h, w2b_ref[...], preferred_element_type=jnp.float32) + b2b_ref[...]

    # --- apply: x * scale + bias, broadcast over the lane (HW) axis ---
    scale = scale.astype(x.dtype)[:, :, None]               # (Bt, C, 1)
    bias = bias.astype(x.dtype)[:, :, None]
    o_ref[...] = (x * scale + bias).astype(o_ref.dtype)


def se_apply_kernel(x_ref, scale_ref, bias_ref, o_ref):
    """Pass 2 of the split path: tiled x*scale+bias over (1, C, hw_tile) blocks."""
    x = x_ref[...]                                          # (1, C, hw_tile)
    scale = scale_ref[...].astype(x.dtype)                  # (1, C, 1) -> lane bcast
    bias = bias_ref[...].astype(x.dtype)
    o_ref[...] = (x * scale + bias).astype(o_ref.dtype)


# ---------------------------------------------------------------------------
# Helpers
# ---------------------------------------------------------------------------
def _vmem_capacity_bytes():
    """Per-core VMEM capacity; conservative 64 MiB (v7x) fallback if unknown."""
    try:
        info = pltpu.get_tpu_info()
        cap = getattr(info, "vmem_capacity_bytes", None)
        if cap:
            return int(cap)
    except Exception:
        pass
    return 64 << 20


def _pick_hw_tile(HW, C, itemsize, block_budget):
    """Largest lane-dense (multiple-of-128) HW chunk whose (C, hw_tile) block
    fits the per-block budget; prefers a divisor of HW to avoid ragged edges."""
    max_tile = max(128, (block_budget // max(1, C * itemsize)) // 128 * 128)
    if HW <= max_tile:
        return HW
    start = min(max_tile, (HW // 128) * 128)
    for t in range(start, 0, -128):
        if HW % t == 0:
            return t
    return min(HW, max_tile)                 # ragged last block handled by Pallas


def _se_scale_bias(x3, w1, b1, w2s, b2s, w2b, b2b):
    """Pass 1 of the split path: per-(B, C) scale/bias.  Tiny (a few KFLOP per
    image), so it stays in XLA rather than a separate Pallas launch."""
    s = jnp.mean(x3, axis=-1, dtype=jnp.float32)                            # (B, C)
    h = jnp.maximum(jnp.dot(s, w1.astype(jnp.float32)) + b1.astype(jnp.float32), 0.0)
    scale = jax.nn.sigmoid(jnp.dot(h, w2s.astype(jnp.float32)) + b2s.astype(jnp.float32))
    bias = jnp.dot(h, w2b.astype(jnp.float32)) + b2b.astype(jnp.float32)
    return scale[..., None], bias[..., None]                                # (B, C, 1)


def _se_apply(x3, scale, bias, *, hw_tile, vmem_limit):
    B, C, HW = x3.shape
    n_hw = pl.cdiv(HW, hw_tile)
    itemsize = x3.dtype.itemsize
    cost = pl.CostEstimate(
        flops=int(2 * B * C * HW),
        transcendentals=0,
        bytes_accessed=int(2 * B * C * HW * itemsize + 2 * B * C * 4),
    )
    return pl.pallas_call(
        se_apply_kernel,
        out_shape=jax.ShapeDtypeStruct((B, C, HW), x3.dtype),
        grid_spec=pltpu.PrefetchScalarGridSpec(
            num_scalar_prefetch=0,
            grid=(B, n_hw),
            in_specs=[
                pl.BlockSpec((1, C, hw_tile), lambda b, h: (b, 0, h)),
                pl.BlockSpec((1, C, 1), lambda b, h: (b, 0, 0)),
                pl.BlockSpec((1, C, 1), lambda b, h: (b, 0, 0)),
            ],
            out_specs=pl.BlockSpec((1, C, hw_tile), lambda b, h: (b, 0, h)),
        ),
        compiler_params=pltpu.CompilerParams(
            dimension_semantics=("parallel", "parallel"),
            vmem_limit_bytes=int(vmem_limit),
        ),
        cost_estimate=cost,
    )(x3, scale, bias)


# ---------------------------------------------------------------------------
# Public wrapper
# ---------------------------------------------------------------------------
def se_block(x, w1, b1, w2, b2, *, max_block_bytes=None, two_pass=None):
    """SE block forward.

    x: (B, C, H, W); w1: (C, Cr); b1: (1, Cr); w2: (Cr, 2C); b2: (1, 2C).
    Linear weights are stored as (in, out) == torch_weight.T.
    """
    B, C, H, W = x.shape
    HW = H * W
    itemsize = x.dtype.itemsize
    Cr = w1.shape[1]

    # Lane-dense view (free for contiguous NCHW) -> HW on the 128-lane axis.
    # TODO(synk): pad HW (or present a (bt, C*HW) slab) when HW % 128 != 0 to
    # avoid masked partial stores on e.g. 7x7 / 14x14 feature maps.
    x3 = x.reshape(B, C, HW)

    # Pre-split FC2 so the kernel never slices the lane axis at +C.
    w2s, w2b = w2[:, :C], w2[:, C:]
    b2s, b2b = b2[:, :C], b2[:, C:]

    # Generation-aware VMEM budget (128 MiB on v5e/v6e, 64 MiB/core on v7x).
    vmem_cap = _vmem_capacity_bytes()
    usable = (vmem_cap * 3) // 4              # headroom for compiler scratch
    two_core_likely = vmem_cap <= (64 << 20)  # v7x-class part (2 TCs/chip)
    headroom = 8 << 20
    if max_block_bytes is None:
        # ~10 MiB on v7x (64 MiB VMEM), 16 MiB on v5e/v6e (128 MiB VMEM).
        max_block_bytes = min((usable - headroom) // 4, 16 << 20)

    per_image = C * HW * itemsize
    weight_bytes = sum(int(a.size) * a.dtype.itemsize
                       for a in (w1, b1, w2s, b2s, w2b, b2b))
    # Single-pass needs double-buffered in + out of one block plus weights.
    fused_fits = 4 * per_image + 2 * weight_bytes + headroom <= usable

    if two_pass is None:
        # Split when one image overflows VMEM, or when batch tiling alone can't
        # produce enough grid steps to pipeline / feed both TensorCores.
        min_batch = 2 if two_core_likely else 1
        two_pass = (not fused_fits) or (B <= min_batch and HW >= 2 * 128)
    elif not two_pass and not fused_fits:
        two_pass = True  # forced fused but it cannot fit VMEM -> fall back

    if two_pass:
        scale, bias = _se_scale_bias(x3, w1, b1, w2s, b2s, w2b, b2b)
        hw_tile = _pick_hw_tile(HW, C, itemsize, max_block_bytes)
        vmem_limit = min(4 * C * hw_tile * itemsize + headroom, usable)
        out = _se_apply(x3, scale, bias, hw_tile=hw_tile, vmem_limit=vmem_limit)
        return out.reshape(B, C, H, W)

    # ---- fused single-pass path ----
    # Images per grid step: fill ~max_block_bytes, then trade block size down
    # only as far as needed to hit the pipelining / megacore step target.
    target_steps = 6 if two_core_likely else 3
    bt = max(1, min(max_block_bytes // per_image, B))
    desired_steps = min(B, target_steps)
    bt = min(bt, max(1, B // desired_steps))
    while B % bt:                             # round down to a divisor of B
        bt -= 1

    block_bytes = bt * per_image
    vmem_limit = min(4 * block_bytes + 2 * weight_bytes + headroom, usable)

    cost = pl.CostEstimate(
        flops=int(3 * B * C * HW + 2 * B * Cr * 3 * C),
        transcendentals=int(B * C),
        bytes_accessed=int(2 * B * C * HW * itemsize + weight_bytes),
    )

    out = pl.pallas_call(
        se_block_kernel,
        out_shape=jax.ShapeDtypeStruct((B, C, HW), x.dtype),
        grid_spec=pltpu.PrefetchScalarGridSpec(
            num_scalar_prefetch=0,
            grid=(B // bt,),
            in_specs=[
                pl.BlockSpec((bt, C, HW), lambda b: (b, 0, 0)),
                pl.BlockSpec((C, Cr), lambda b: (0, 0)),
                pl.BlockSpec((1, Cr), lambda b: (0, 0)),
                pl.BlockSpec((Cr, C), lambda b: (0, 0)),
                pl.BlockSpec((1, C), lambda b: (0, 0)),
                pl.BlockSpec((Cr, C), lambda b: (0, 0)),
                pl.BlockSpec((1, C), lambda b: (0, 0)),
            ],
            out_specs=pl.BlockSpec((bt, C, HW), lambda b: (b, 0, 0)),
        ),
        compiler_params=pltpu.CompilerParams(
            dimension_semantics=("parallel",),
            vmem_limit_bytes=int(vmem_limit),
        ),
        cost_estimate=cost,
    )(x3, w1, b1, w2s, b2s, w2b, b2b)
    return out.reshape(B, C, H, W)


# ---------------------------------------------------------------------------
# Reference + demo
# ---------------------------------------------------------------------------
def reference_se_block(x, w1, b1, w2, b2):
    B, C, H, W = x.shape
    s = jnp.mean(x, axis=(2, 3))                       # (B, C)
    h = jnp.maximum(s @ w1 + b1, 0.0)                  # (B, Cr)
    e = h @ w2 + b2                                    # (B, 2C)
    f_scale = jax.nn.sigmoid(e[:, :C])[:, :, None, None]
    bias = e[:, C:][:, :, None, None]
    return x * f_scale + bias


if __name__ == "__main__":
    B, C, H, W = 2, 8, 16, 16
    reduction_factor = 4
    Cr = C // reduction_factor

    key = jax.random.PRNGKey(0)
    kx, kw1, kb1, kw2, kb2 = jax.random.split(key, 5)

    x = jax.random.normal(kx, (B, C, H, W), dtype=jnp.float32)

    # Deterministic parameter init (Linear weights stored as (in, out) = W.T).
    w1 = jax.random.normal(kw1, (C, Cr), dtype=jnp.float32) * 0.1
    b1 = jax.random.normal(kb1, (1, Cr), dtype=jnp.float32) * 0.1
    w2 = jax.random.normal(kw2, (Cr, 2 * C), dtype=jnp.float32) * 0.1
    b2 = jax.random.normal(kb2, (1, 2 * C), dtype=jnp.float32) * 0.1

    ref = reference_se_block(x, w1, b1, w2, b2)

    # Exercise both dispatch paths plus the auto heuristic, whatever the chip.
    out_fused = jax.block_until_ready(se_block(x, w1, b1, w2, b2, two_pass=False))
    out_split = jax.block_until_ready(se_block(x, w1, b1, w2, b2, two_pass=True))
    out_auto = jax.block_until_ready(se_block(x, w1, b1, w2, b2))

    for out in (out_fused, out_split, out_auto):
        assert out.shape == (B, C, H, W)
        assert jnp.allclose(out, ref, atol=1e-5, rtol=1e-5), "mismatch vs reference"

    print("KERNEL_OK")
</pallas_src>

<mosaic_0001>
module attributes {stable_mosaic.version = 11 : i64} {
  func.func @se_block_kernel(%arg0: i32, %arg1: memref<1x8x256xf32, #tpu.memory_space<vmem>>, %arg2: memref<8x2xf32, #tpu.memory_space<vmem>>, %arg3: memref<1x2xf32, #tpu.memory_space<vmem>>, %arg4: memref<2x8xf32, #tpu.memory_space<vmem>>, %arg5: memref<1x8xf32, #tpu.memory_space<vmem>>, %arg6: memref<2x8xf32, #tpu.memory_space<vmem>>, %arg7: memref<1x8xf32, #tpu.memory_space<vmem>>, %arg8: memref<1x8x256xf32, #tpu.memory_space<vmem>>) attributes {dimension_semantics = [#tpu.dimension_semantics<parallel>], iteration_bounds = array<i64: 2>, scalar_prefetch = 0 : i64, scratch_operands = 0 : i64, tpu.core_type = #tpu.core_type<tc>, window_params = [{transform_indices = @transform_0, window_bounds = array<i64: 1, 8, 256>}, {pipeline_mode = #tpu.pipeline_mode<synchronous>, transform_indices = @transform_1, window_bounds = array<i64: 8, 2>}, {pipeline_mode = #tpu.pipeline_mode<synchronous>, transform_indices = @transform_2, window_bounds = array<i64: 1, 2>}, {pipeline_mode = #tpu.pipeline_mode<synchronous>, transform_indices = @transform_3, window_bounds = array<i64: 2, 8>}, {pipeline_mode = #tpu.pipeline_mode<synchronous>, transform_indices = @transform_4, window_bounds = array<i64: 1, 8>}, {pipeline_mode = #tpu.pipeline_mode<synchronous>, transform_indices = @transform_5, window_bounds = array<i64: 2, 8>}, {pipeline_mode = #tpu.pipeline_mode<synchronous>, transform_indices = @transform_6, window_bounds = array<i64: 1, 8>}, {transform_indices = @transform_7, window_bounds = array<i64: 1, 8, 256>}]} {
    %c0 = arith.constant 0 : index
    %c0_0 = arith.constant 0 : index
    %c0_1 = arith.constant 0 : index
    %0 = vector.load %arg1[%c0, %c0_0, %c0_1] : memref<1x8x256xf32, #tpu.memory_space<vmem>>, vector<1x8x256xf32>
    %cst = arith.constant dense<0.000000e+00> : vector<1x8xf32>
    %1 = vector.multi_reduction <add>, %0, %cst [2] : vector<1x8x256xf32> to vector<1x8xf32>
    %cst_2 = arith.constant 3.906250e-03 : f32
    %2 = vector.broadcast %cst_2 : f32 to vector<1x8xf32>
    %3 = arith.mulf %1, %2 : vector<1x8xf32>
    %c0_3 = arith.constant 0 : index
    %c0_4 = arith.constant 0 : index
    %4 = vector.load %arg2[%c0_3, %c0_4] : memref<8x2xf32, #tpu.memory_space<vmem>>, vector<8x2xf32>
    %cst_5 = arith.constant dense<0.000000e+00> : vector<1x2xf32>
    %5 = tpu.matmul %3, %4, %cst_5 {dimension_numbers = #tpu.dot_dimension_numbers<[1], [0], [0], [1], [0, 0, 1, 1], [], []>} : vector<1x8xf32>, vector<8x2xf32>, vector<1x2xf32> -> vector<1x2xf32>
    %c0_6 = arith.constant 0 : index
    %c0_7 = arith.constant 0 : index
    %6 = vector.load %arg3[%c0_6, %c0_7] : memref<1x2xf32, #tpu.memory_space<vmem>>, vector<1x2xf32>
    %7 = arith.addf %5, %6 : vector<1x2xf32>
    %cst_8 = arith.constant 0.000000e+00 : f32
    %8 = vector.broadcast %cst_8 : f32 to vector<1x2xf32>
    %9 = arith.maximumf %7, %8 : vector<1x2xf32>
    %c0_9 = arith.constant 0 : index
    %c0_10 = arith.constant 0 : index
    %10 = vector.load %arg4[%c0_9, %c0_10] : memref<2x8xf32, #tpu.memory_space<vmem>>, vector<2x8xf32>
    %cst_11 = arith.constant dense<0.000000e+00> : vector<1x8xf32>
    %11 = tpu.matmul %9, %10, %cst_11 {dimension_numbers = #tpu.dot_dimension_numbers<[1], [0], [0], [1], [0, 0, 1, 1], [], []>} : vector<1x2xf32>, vector<2x8xf32>, vector<1x8xf32> -> vector<1x8xf32>
    %c0_12 = arith.constant 0 : index
    %c0_13 = arith.constant 0 : index
    %12 = vector.load %arg5[%c0_12, %c0_13] : memref<1x8xf32, #tpu.memory_space<vmem>>, vector<1x8xf32>
    %13 = arith.addf %11, %12 : vector<1x8xf32>
    %14 = arith.negf %13 : vector<1x8xf32>
    %15 = math.exp %14 : vector<1x8xf32>
    %cst_14 = arith.constant 1.000000e+00 : f32
    %16 = vector.broadcast %cst_14 : f32 to vector<1x8xf32>
    %17 = arith.addf %16, %15 : vector<1x8xf32>
    %18 = arith.divf %16, %17 : vector<1x8xf32>
    %c0_15 = arith.constant 0 : index
    %c0_16 = arith.constant 0 : index
    %19 = vector.load %arg6[%c0_15, %c0_16] : memref<2x8xf32, #tpu.memory_space<vmem>>, vector<2x8xf32>
    %cst_17 = arith.constant dense<0.000000e+00> : vector<1x8xf32>
    %20 = tpu.matmul %9, %19, %cst_17 {dimension_numbers = #tpu.dot_dimension_numbers<[1], [0], [0], [1], [0, 0, 1, 1], [], []>} : vector<1x2xf32>, vector<2x8xf32>, vector<1x8xf32> -> vector<1x8xf32>
    %c0_18 = arith.constant 0 : index
    %c0_19 = arith.constant 0 : index
    %21 = vector.load %arg7[%c0_18, %c0_19] : memref<1x8xf32, #tpu.memory_space<vmem>>, vector<1x8xf32>
    %22 = arith.addf %20, %21 : vector<1x8xf32>
    %23 = vector.shape_cast %18 : vector<1x8xf32> to vector<1x8x1xf32>
    %24 = vector.shape_cast %22 : vector<1x8xf32> to vector<1x8x1xf32>
    %25 = vector.broadcast %23 : vector<1x8x1xf32> to vector<1x8x256xf32>
    %26 = arith.mulf %0, %25 : vector<1x8x256xf32>
    %27 = vector.broadcast %24 : vector<1x8x1xf32> to vector<1x8x256xf32>
    %28 = arith.addf %26, %27 : vector<1x8x256xf32>
    %c0_20 = arith.constant 0 : index
    %c0_21 = arith.constant 0 : index
    %c0_22 = arith.constant 0 : index
    %29 = vector.load %arg8[%c0_20, %c0_21, %c0_22] : memref<1x8x256xf32, #tpu.memory_space<vmem>>, vector<1x8x256xf32>
    tpu.vector_store %arg8[%c0_20, %c0_21, %c0_22], %28 {strides = array<i32>} : memref<1x8x256xf32, #tpu.memory_space<vmem>>, vector<1x8x256xf32>,
    return
  }
  func.func @transform_0(%arg0: i32) -> (i32, i32, i32) {
    %c0_i32 = arith.constant 0 : i32
    %c0_i32_0 = arith.constant 0 : i32
    %c0_i32_1 = arith.constant 0 : i32
    return %arg0, %c0_i32, %c0_i32_0 : i32, i32, i32
  }
  func.func @transform_1(%arg0: i32) -> (i32, i32) {
    %c0_i32 = arith.constant 0 : i32
    %c0_i32_0 = arith.constant 0 : i32
    %c0_i32_1 = arith.constant 0 : i32
    return %c0_i32, %c0_i32_0 : i32, i32
  }
  func.func @transform_2(%arg0: i32) -> (i32, i32) {
    %c0_i32 = arith.constant 0 : i32
    %c0_i32_0 = arith.constant 0 : i32
    %c0_i32_1 = arith.constant 0 : i32
    return %c0_i32, %c0_i32_0 : i32, i32
  }
  func.func @transform_3(%arg0: i32) -> (i32, i32) {
    %c0_i32 = arith.constant 0 : i32
    %c0_i32_0 = arith.constant 0 : i32
    %c0_i32_1 = arith.constant 0 : i32
    return %c0_i32, %c0_i32_0 : i32, i32
  }
  func.func @transform_4(%arg0: i32) -> (i32, i32) {
    %c0_i32 = arith.constant 0 : i32
    %c0_i32_0 = arith.constant 0 : i32
    %c0_i32_1 = arith.constant 0 : i32
    return %c0_i32, %c0_i32_0 : i32, i32
  }
  func.func @transform_5(%arg0: i32) -> (i32, i32) {
    %c0_i32 = arith.constant 0 : i32
    %c0_i32_0 = arith.constant 0 : i32
    %c0_i32_1 = arith.constant 0 : i32
    return %c0_i32, %c0_i32_0 : i32, i32
  }
  func.func @transform_6(%arg0: i32) -> (i32, i32) {
    %c0_i32 = arith.constant 0 : i32
    %c0_i32_0 = arith.constant 0 : i32
    %c0_i32_1 = arith.constant 0 : i32
    return %c0_i32, %c0_i32_0 : i32, i32
  }
  func.func @transform_7(%arg0: i32) -> (i32, i32, i32) {
    %c0_i32 = arith.constant 0 : i32
    %c0_i32_0 = arith.constant 0 : i32
    %c0_i32_1 = arith.constant 0 : i32
    return %arg0, %c0_i32, %c0_i32_0 : i32, i32, i32
  }
}

</mosaic_0001>

<bundles_post_ra>
// kernel: tpu_custom_call.1
= control target key start
LH: loop header
LB: loop body
LE: loop exit
PB: predicated region body
PF: predicated region fallthrough
CT: control target
= control target key end

     0   :  { %12 = vsyncpa [#allocation3], 0  ;;  %s1052_s0 = inlined_call_operand.hbm [shape: f32[2,8,256], index: 0, kind: input, shape index: {}]   ;;  %s1053_s1 = inlined_call_operand.vmem [shape: f32[8,2], index: 1, kind: input, shape index: {}]   ;;  %s1054_s2 = inlined_call_operand.vmem [shape: f32[1,2], index: 2, kind: input, shape index: {}]   ;;  %s1055_s3 = inlined_call_operand.vmem [shape: f32[2,8], index: 3, kind: input, shape index: {}]   ;;  %s1056_s4 = inlined_call_operand.vmem [shape: f32[1,8], index: 4, kind: input, shape index: {}]   ;;  %s1057_s5 = inlined_call_operand.vmem [shape: f32[2,8], index: 5, kind: input, shape index: {}]   ;;  %s1058_s6 = inlined_call_operand.vmem [shape: f32[1,8], index: 6, kind: input, shape index: {}]   ;;  %s1059_s7 = inlined_call_operand.hbm [shape: f32[2,8,256], index: 7, kind: output, shape index: {}]  }
   0x1   :  { %14 = vsyncpa [#allocation3 + $0x1], 0 }
   0x2   :  { %15 = vsyncpa [#allocation4], 0 }
   0x3   :  { %17 = vsyncpa [#allocation4 + $0x1], 0  ;;  %s883_s24 = smov 0   ;;  %s885_s25 = smov 0  }
   0x4   :  { %s887_s26 = smov 0   ;;  %s889_s27 = smov 0  }
   0x5 LB: > { %s904_s28 = sadd.s32 4294967295, %s837_s27   ;;  %s650_s29 = sadd.s32 4294967294, %s837_s27   ;;  %s837_s27 = sphi %s889_s27, %s1076_s27   ;;  %s833_s26 = sphi %s887_s26, %s1075_s26   ;;  %s829_s25 = sphi %s885_s25, %s1074_s25   ;;  %s825_s24 = sphi %s883_s24, %s1073_s24  }
   0x6   : > { %s908_s30 = sadd.s32 1, %s837_s27   ;;  %s30_s8 = sadd.s32 1, %s833_s26 }
   0x7   : > { %s27_s9 = ssub.s32 %s837_s27, %s908_s30  ;;  %p37_p0 = scmp.ne.s32.totalorder %s833_s26, %s829_s25 }
   0x8   : > { %p28_p1 = scmp.eq.s32.totalorder %s27_s9, 0  ;;  %p38_p2 = scmp.eq.s32.totalorder %s837_s27, 0 }
   0x9   : > { %p43_p3 = scmp.ne.s32.totalorder %s829_s25, %s825_s24  ;;  %p44_p4 = scmp.eq.s32.totalorder %s904_s28, 0 }
   0xa   : > { %s920_s10 = scalar_select %p28_p1, %s833_s26, %s30_s8  }
   0xb   : > { %p922_p5 = por %p38_p2, %p37_p0  ;;  %p926_p6 = por %p44_p4, %p43_p3 }
   0xc   : > { %p193_p7 = scmp.eq.s32.totalorder %s904_s28, 1  ;;  %p199_p8 = scmp.eq.s32.totalorder %s650_s29, 1 }
   0xd   : > { %s1063_s12 = scalar_select %p926_p6, 1, 0 }
   0xe   : > { %p705_p10 = scmp.lt.s32.totalorder %s837_s27, 2  ;;  %p933_p11 = por %p193_p7, %p37_p0 }
   0xf   : > { %p937_p12 = por %p199_p8, %p43_p3  ;;  %s237_s15 = sand.u32 1, %s833_s26  }
  0x10   : > { %s1064_s13 = scalar_select %p933_p11, 1, 0 }
  0x11   : > { %s1065_s14 = scalar_select %p937_p12, 1, 0 }
  0x12   : > { %s670_s16 = sshll.u32 %s837_s27, 8  ;;  %s653_s17 = sshll.u32 %s237_s15, 4 }
  0x13   : > { %s946_s20 = scalar_lea.hbm %s1052_s0, %s670_s16  ;;  %s241_s21 = scalar_lea.vmem [#allocation2], %s653_s17 }
  0x14   : > { %s249_s22 = sshll.u32 %s241_s21, 4  ;;  %p950_p13 = pnand %p705_p10, %p922_p5  ;;  %s954_s22 = int_to_ptr.vmem [resolvable:$true] %s249_s22 }
  0x15   : > { %s238_s29 = scalar_lea.sflag [#allocation3], %s237_s15  ;;  %s745_s8 = scalar_lea.hbm %s946_s20, 256 }
  0x16   : > { %p746_p2 = scmp.ne.s32.totalorder %s946_s20, %s745_s8  ;;  %p747_p3 = pneg %p950_p13 }
  0x17   : > { %s750_s11 = scalar_lea.hbm %s1052_s0, 512  ;;  %p751_p5 = scmp.lt.s32.totalorder %s946_s20, %s1052_s0 }
  0x18   : > { %p748_p4 = pnand %p747_p3, %p746_p2  ;;  %p752_p8 = scmp.lt.s32.totalorder %s750_s11, %s745_s8 }
  0x1a   : > { %p749_p7 = pneg %p748_p4  ;;  %p753_p10 = por %p752_p8, %p751_p5 }
  0x1c   : > { %p754_p9 = pnand %p753_p10, %p749_p7 }
  0x1e   : > { %757 = shalt.err (!%p754_p9)
}
  0x1f   : > { %s758_s15 = scalar_lea.vmem %s954_s22, 256  ;;  %s839_s19 = smov [#allocation2]  }
  0x20   : > { %p759_p0 = scmp.ne.s32.totalorder %s954_s22, %s758_s15  ;;  %s763_s21 = sshll.u32 %s839_s19, 4  ;;  %s764_s21 = int_to_ptr.vmem [resolvable:$false] %s763_s21 }
  0x21   : > { %s765_s9 = scalar_lea.vmem %s764_s21, 512  ;;  %p766_p4 = scmp.lt.s32.totalorder %s954_s22, %s764_s21 }
  0x22   : > { %p761_p1 = pnand %p759_p0, %p747_p3  ;;  %p767_p12 = scmp.lt.s32.totalorder %s765_s9, %s758_s15 }
  0x24   : > { %p762_p2 = pneg %p761_p1  ;;  %p768_p11 = por %p767_p12, %p766_p4 }
  0x26   : > { %p769_p6 = pnand %p768_p11, %p762_p2 }
  0x28   : > { %772 = shalt.err (!%p769_p6)
}
  0x29   : > { %700 = dma.hbm_to_vmem [thread:$0]  (!%p950_p13), %s946_s20, 256, %s954_s22, %s238_s29  }
  0x2a   : > { %p1067_p9 = scmp.lt.s32.totalorder %s837_s27, 3  ;;  %p1068_p7 = scmp.ge.s32.totalorder %s837_s27, 1 }
  0x2c   : > { %p255_p0 = pnand %p1068_p7, %p1067_p9 }
  0x2d   : > { %s981_s8 = sand.u32 (!%p255_p0), 1, %s829_s25   ;;  %p1069_p6 = scmp.ne.s32.totalorder (!%p255_p0), %s1063_s12, 0 }
  0x2e   : > { %258 = sbr.rel (%p255_p0) target bundleno = 755 (0x2f3), region = 48  ;;  %s657_s16 = sshll.u32 (!%p255_p0), %s981_s8, 4 }
  0x2f   : > { %s261_s11 = scalar_lea.sflag (!%p255_p0), [#allocation3], %s981_s8  ;;  %s264_s23 = scalar_lea.vmem (!%p255_p0), [#allocation2], %s657_s16 }
  0x33   : > { %816 = dma.done.wait (%p1069_p6), %s261_s11, 256  }
  0x34   : > { %818 = vsyncadd (%p1069_p6), %s261_s11, 4294967040  ;;  %v295_v0 = vld [vmem:[%s264_s23] sm:$0xff]  ;;  %v296_v1 = vld [vmem:[%s264_s23 + $0x8] sm:$0xff]  ;;  %v840_v3 = vmov 0.0   ;;  %vm841_vm0 = vmmov 0   ;;  %v304_v5 = vlaneseq  ;;  %vm310_vm1 = vcmask 64512  }
  0x35   : > { %v297_v2 = vadd.f32 %v296_v1, %v295_v0  ;;  %678 = vmatprep.subr.mxu0 %v840_v3  ;;  %v301_v4 = vld [vmem:[%s1053_s1] sm:$0xff]  ;;  %683 = vmatprep.subr.mxu1 %v840_v3  ;;  %vm390_vm2 = vcmask 1041408   ;;  %vm386_vm3 = vcmask 15360   ;;  %s671_s20 = sshll.u32 %s904_s28, 8  ;;  %s294_s22 = scalar_lea.vmem [#allocation5], %s657_s16 }
  0x36   : > { %679 = vmatpush3.msra.mxu0 %v301_v4  ;;  %680 = vmatprep.mubr.msk.f32.mxu0 %vm841_vm0, %v840_v3  ;;  %v305_v6 = vand.u32 127, %v304_v5  ;;  %v307_v7 = vshrl.u32 %v304_v5, 7  ;;  %v384_v12 = vld [vmem:[%s1055_s3] sm:$0x3]  ;;  %s580_s12 = sshll.u32 %s294_s22, 4  ;;  %s1015_s18 = scalar_lea.hbm %s1059_s7, %s671_s20  ;;  %s581_s12 = int_to_ptr.vmem [resolvable:$true] %s580_s12 }
  0x37   : > { %298 = vadd.xlane.f32.xlu0 %v297_v2  ;;  %688 = vmatprep.subr.mxu0 %v840_v3  ;;  %v470_v13 = vld [vmem:[%s1057_s5] sm:$0x3]  ;;  %s566_s15 = scalar_lea.sflag [#allocation4], %s981_s8  ;;  %s773_s19 = scalar_lea.vmem %s581_s12, 256 }
  0x38   : > { %685 = vmatprep.mubr.msk.f32.mxu1 %vm841_vm0, %v840_v3  ;;  %v308_v8 = vsub.s32 %v305_v6, %v307_v7  ;;  %684 = vmatpush3.msk.msra.mxu1 %vm390_vm2, %v384_v12  ;;  %v302_v14 = vld [vmem:[%s1054_s2] sm:$0x1]  ;;  %v547_v21 = vsub.s32 0, %v307_v7  ;;  %p774_p11 = scmp.ne.s32.totalorder %s581_s12, %s773_s19  ;;  %p1070_p12 = scmp.ne.s32.totalorder %s1064_s13, 0 }
  0x39   : > { %v385_v19 = vld [vmem:[%s1056_s4] sm:$0x1]  ;;  %s842_s28 = smov [#allocation5]  }
  0x3a   : > { %v471_v20 = vld [vmem:[%s1058_s6] sm:$0x1]  ;;  %p775_p13 = pnand %p774_p11, %p1070_p12  ;;  %s777_s16 = sshll.u32 %s842_s28, 4  ;;  %s778_s16 = int_to_ptr.vmem [resolvable:$false] %s777_s16 }
  0x3b   : > { %s779_s21 = scalar_lea.vmem %s778_s16, 512  ;;  %p780_p3 = scmp.lt.s32.totalorder %s581_s12, %s778_s16 }
  0x3c   : > { %p776_p1 = pneg %p775_p13  ;;  %p781_p5 = scmp.lt.s32.totalorder %s779_s21, %s773_s19 }
  0x3e   : > { %p782_p8 = por %p781_p5, %p780_p3 }
  0x40   : > { %p783_p10 = pnand %p782_p8, %p776_p1 }
  0xc0   : > { %v299_v9 = vpop.xlane.xlu0 %298 }
  0xc1   : > { %v300_v10 = vmul.f32 0.00390625, %v299_v9 }
  0xc3   : > { %v309_v11 = vrot.slane %v300_v10, %v308_v8 }
  0xc5   : > { %681 = vmatmul.mubr.msk.f32.vlgmr.msra.gmra.mxu0 %vm310_vm1, %v309_v11 }
  0xc6   : > { %690 = vmatprep.mubr.msk.f32.mxu0 %vm841_vm0, %v840_v3  ;;  %689 = vmatpush3.msk.msra.mxu0 %vm390_vm2, %v470_v13 }
 0x185   : > { %v379_v15 = vpop.f32.mrf.mxu0 }
 0x186   : > { %v380_v16 = vadd.f32 %v379_v15, %v302_v14 }
 0x187   : > { %v682_v17 = vpop.f32.mrf.mxu0 }
 0x188   : > { %v383_v18 = vmax.f32 %v380_v16, 0.0 }
 0x18a   : > { %686 = vmatmul.mubr.msk.f32.vlgmr.msra.gmra.mxu1 %vm386_vm3, %v383_v18  ;;  %691 = vmatmul.mubr.msk.f32.vlgmr.msra.gmra.mxu0 %vm386_vm3, %v383_v18 }
 0x24a   : > { %v460_v22 = vpop.f32.mrf.mxu1  ;;  %v541_v23 = vpop.f32.mrf.mxu0 }
 0x24b   : > { %v461_v24 = vadd.f32 %v460_v22, %v385_v19  ;;  %v542_v25 = vadd.f32 %v541_v23, %v471_v20 }
 0x24c   : > { %v687_v26 = vpop.f32.mrf.mxu1  ;;  %v692_v27 = vpop.f32.mrf.mxu0 }
 0x24d   : > { %v662_v28 = vmul.f32 -1.442695, %v461_v24  ;;  %v555_v29 = vrot.slane %v542_v25, %v547_v21 }
 0x24f   : > { %741 = vpow2.f32 %v662_v28  ;;  %557 = vbcast.lane.b32.xlu1 %v555_v29, 256 }
 0x25c   : > { %v742_v30 = vpop.eup %741 }
 0x25d   : > { %v467_v31 = vadd.f32 1.0, %v742_v30 }
 0x25f   : > { %743 = vrcp.f32 %v467_v31 }
 0x26c   : > { %v744_v32 = vpop.eup %743 }
 0x26d   : > { %v548_v33 = vrot.slane %v744_v32, %v547_v21 }
 0x26f   : > { %550 = vbcast.lane.b32.xlu0 %v548_v33, 256 }
 0x2c1   : > { %v558_v37 = vpop.permute.xlu1 %557 }
 0x2e1   : > { %v551_v34 = vpop.permute.xlu0 %550 }
 0x2e2   : > { %v559_v35 = vmul.f32 %v551_v34, %v295_v0  ;;  %v560_v36 = vmul.f32 %v551_v34, %v296_v1 }
 0x2e4   : > { %v561_v38 = vadd.f32 %v559_v35, %v558_v37  ;;  %v562_v39 = vadd.f32 %v560_v36, %v558_v37 }
 0x2e6   : > { %563 = vst [vmem:[%s294_s22] sm:$0xff] %v561_v38  ;;  %564 = vst [vmem:[%s294_s22 + $0x8] sm:$0xff] %v562_v39 }
 0x2e7   : > { %786 = shalt.err (!%p783_p10)
}
 0x2e8   : > { %s787_s9 = scalar_lea.hbm %s1015_s18, 256  ;;  %s791_s23 = scalar_lea.hbm %s1059_s7, 512 }
 0x2e9   : > { %p788_p2 = scmp.ne.s32.totalorder %s1015_s18, %s787_s9  ;;  %p792_p7 = scmp.lt.s32.totalorder %s1015_s18, %s1059_s7 }
 0x2ea   : > { %p793_p0 = scmp.lt.s32.totalorder %s791_s23, %s787_s9 }
 0x2eb   : > { %p789_p4 = pnand %p788_p2, %p1070_p12 }
 0x2ec   : > { %p794_p6 = por %p793_p0, %p792_p7 }
 0x2ed   : > { %p790_p9 = pneg %p789_p4 }
 0x2ef   : > { %p795_p11 = pnand %p794_p6, %p790_p9 }
 0x2f1   : > { %798 = shalt.err (!%p795_p11)
}
 0x2f2   : > { %695 = dma.vmem_to_hbm [thread:$0]  (%p1070_p12), %s581_s12, 256, %s1015_s18, %s566_s15  }
 0x2f3 PF: > { %s592_s29 = sand.u32 1, %s825_s24   ;;  %p1071_p13 = scmp.ne.s32.totalorder %s1065_s14, 0 }
 0x2f4   : > { %p1072_p1 = scmp.ge.s32.totalorder %s837_s27, 2  ;;  %s593_s17 = scalar_lea.sflag [#allocation4], %s592_s29 }
 0x2f6   : > { %p702_p3 = pnand %p1072_p1, %p1071_p13 }
 0x2f8   : > { %p703_p5 = pneg %p702_p3 }
 0x2fa   : > { %820 = dma.done.wait (%p703_p5), %s593_s17, 256  }
 0x2fb   : > { %822 = vsyncadd (%p703_p5), %s593_s17, 4294967040  ;;  %p20_p8 = scmp.ge.s32.totalorder %s908_s30, 4   ;;  %s1073_s24 = smov %s829_s25 }
 0x2fc   : > { %s1074_s25 = smov %s833_s26  ;;  %s1075_s26 = smov %s920_s10 }
 0x2fd   : > { %s1076_s27 = smov %s908_s30  ;;  %22 = sbr.rel (!%p20_p8) target bundleno = 5 (0x5), region = 93 }
 0x302   :  { %598 = vsyncpa [#allocation3], 1 }
 0x303   :  { %600 = vsyncpa [#allocation3 + $0x1], 1 }
 0x304   :  { %601 = vsyncpa [#allocation4], 1 }
 0x305   :  { %603 = vsyncpa [#allocation4 + $0x1], 1 }

</bundles_post_ra>
